<compile_context>
chip_gen: v7x
topology: tpu7x:2x2x1
jax: 0.10.0
libtpu: 0.0.40
codegen_flags: <defaults>
</compile_context>

<pallas_src>
import jax
import jax.numpy as jnp
from jax.experimental import pallas as pl
from jax.experimental.pallas import tpu as pltpu

# ---------------------------------------------------------------------------
# Static configuration (matches args.hnet_input_size=8, output_size=64,
# args.hnet_hidden_size_scale=2 -> hidden=32).
# ---------------------------------------------------------------------------
IN = 8          # hnet_input_size
H = 32          # hidden_size
OUT = 64        # output_size
LW = 128        # lane width / per-gate padded width


def _rup8(n):
    return ((n + 7) // 8) * 8


# Row layout of the packed parameter slab (lane width = 3*LW = 384).
R_W1 = 0                      # rows [0:8)    fc1 weight (IN, H)    at cols [0:H)
R_WIH = R_W1 + _rup8(IN)      # rows [8:40)   W_ih gate g (H, H)    at cols [g*LW : g*LW+H)
R_WHH = R_WIH + _rup8(H)      # rows [40:72)  W_hh gate g (H, H)    at cols [g*LW : g*LW+H)
R_W2 = R_WHH + _rup8(H)       # rows [72:104) fc2 weight (H, OUT)   at cols [0:OUT)
R_B1 = R_W2 + _rup8(H)        # row 104       fc1 bias              at cols [0:H)
R_BIH = R_B1 + 1              # row 105       b_ih gate g           at cols [g*LW : g*LW+H)
R_BHH = R_BIH + 1             # row 106       b_hh gate g           at cols [g*LW : g*LW+H)
R_B2 = R_BHH + 1              # row 107       fc2 bias              at cols [0:OUT)
ROWS = _rup8(R_B2 + 1)        # 112
SLAB_W = 3 * LW               # 384


# ---------------------------------------------------------------------------
# Kernel
# ---------------------------------------------------------------------------
def hypernet_kernel(xh_ref, w_ref, o_ref):
    # Dynamic inputs (single packed (2, 128) buffer).
    x = xh_ref[0:1, 0:IN]                     # (1, IN)   SoW
    h = xh_ref[1:2, :]                        # (1, 128)  hidden state, lanes >= H are zero

    # Static views into the packed parameter slab.
    w1 = w_ref[R_W1:R_W1 + IN, 0:LW]          # (IN, 128)
    wih = w_ref[R_WIH:R_WIH + H, :]           # (H, 384)   gates at 128-aligned column blocks
    whh = w_ref[R_WHH:R_WHH + H, :]           # (H, 384)
    w2 = w_ref[R_W2:R_W2 + H, 0:LW]           # (H, 128)
    b1 = w_ref[R_B1:R_B1 + 1, 0:LW]           # (1, 128)
    bih = w_ref[R_BIH:R_BIH + 1, :]           # (1, 384)
    bhh = w_ref[R_BHH:R_BHH + 1, :]           # (1, 384)
    b2 = w_ref[R_B2:R_B2 + 1, 0:LW]           # (1, 128)

    # fc1 + ReLU  -> (1, 128), lanes >= H stay exactly 0 (zero-padded weights/bias)
    a = jnp.dot(x, w1, preferred_element_type=jnp.float32) + b1
    a = jnp.maximum(a, 0.0)

    # GRU single step. Gate g lives at lanes [g*LW, g*LW + H) of gi/gh, so all
    # gate extractions below are vreg-aligned (128-multiple) slices.
    gi = jnp.dot(a[:, 0:H], wih, preferred_element_type=jnp.float32) + bih   # (1, 384)
    gh = jnp.dot(h[:, 0:H], whh, preferred_element_type=jnp.float32) + bhh   # (1, 384)

    r = jax.nn.sigmoid(gi[:, 0:LW] + gh[:, 0:LW])
    z = jax.nn.sigmoid(gi[:, LW:2 * LW] + gh[:, LW:2 * LW])
    n = jnp.tanh(gi[:, 2 * LW:3 * LW] + r * gh[:, 2 * LW:3 * LW])
    h_new = (1.0 - z) * n + z * h             # (1, 128); padded lanes remain 0

    # fc2 -> (1, 128), lanes >= OUT are 0
    out = jnp.dot(h_new[:, 0:H], w2, preferred_element_type=jnp.float32) + b2

    # Single lane-dense (2, 128) output slab: row 0 = out, row 1 = h_new.
    o_ref[0:1, :] = out
    o_ref[1:2, :] = h_new


# ---------------------------------------------------------------------------
# Wrapper
# ---------------------------------------------------------------------------
def pack_params(p):
    """Pack PyTorch-native parameters into one (ROWS, 384) f32 slab. Do this once."""
    W = jnp.zeros((ROWS, SLAB_W), jnp.float32)
    W = W.at[R_W1:R_W1 + IN, 0:H].set(p["fc1_w"].T)          # (IN, H)
    for g in range(3):                                       # gate order: r, z, n
        c = g * LW
        W = W.at[R_WIH:R_WIH + H, c:c + H].set(p["w_ih"][g * H:(g + 1) * H, :].T)
        W = W.at[R_WHH:R_WHH + H, c:c + H].set(p["w_hh"][g * H:(g + 1) * H, :].T)
        W = W.at[R_BIH, c:c + H].set(p["b_ih"][g * H:(g + 1) * H])
        W = W.at[R_BHH, c:c + H].set(p["b_hh"][g * H:(g + 1) * H])
    W = W.at[R_W2:R_W2 + H, 0:OUT].set(p["fc2_w"].T)          # (H, OUT)
    W = W.at[R_B1, 0:H].set(p["fc1_b"])
    W = W.at[R_B2, 0:OUT].set(p["fc2_b"])
    return W


def hypernetwork_forward(sow, h0, wslab):
    """sow: (IN,), h0: (1, H), wslab: packed params. Returns (out (OUT,), h_new (1, H))."""
    xh = jnp.zeros((2, LW), jnp.float32)
    xh = xh.at[0, :IN].set(sow.astype(jnp.float32))
    xh = xh.at[1, :H].set(h0.reshape(-1).astype(jnp.float32))

    res = pl.pallas_call(
        hypernet_kernel,
        out_shape=jax.ShapeDtypeStruct((2, LW), jnp.float32),
        in_specs=[
            pl.BlockSpec(memory_space=pltpu.MemorySpace.VMEM),   # xh (dynamic, 1 KB)
            pl.BlockSpec(memory_space=pltpu.MemorySpace.VMEM),   # packed params (1 DMA)
        ],
        out_specs=pl.BlockSpec(memory_space=pltpu.MemorySpace.VMEM),
    )(xh, wslab)

    out = res[0, :OUT]       # torch.squeeze(x, 0)
    h_new = res[1:2, :H]     # (1, H)
    return out, h_new


# ---------------------------------------------------------------------------
# Reference + synthetic parameters
# ---------------------------------------------------------------------------
def make_params(key):
    """Deterministic synthetic parameters in PyTorch-native shapes."""
    ks = jax.random.split(key, 8)
    s1 = 1.0 / jnp.sqrt(IN)
    sh = 1.0 / jnp.sqrt(H)
    return {
        "fc1_w": jax.random.uniform(ks[0], (H, IN), jnp.float32, -s1, s1),
        "fc1_b": jax.random.uniform(ks[1], (H,), jnp.float32, -s1, s1),
        "w_ih": jax.random.uniform(ks[2], (3 * H, H), jnp.float32, -sh, sh),
        "w_hh": jax.random.uniform(ks[3], (3 * H, H), jnp.float32, -sh, sh),
        "b_ih": jax.random.uniform(ks[4], (3 * H,), jnp.float32, -sh, sh),
        "b_hh": jax.random.uniform(ks[5], (3 * H,), jnp.float32, -sh, sh),
        "fc2_w": jax.random.uniform(ks[6], (OUT, H), jnp.float32, -sh, sh),
        "fc2_b": jax.random.uniform(ks[7], (OUT,), jnp.float32, -sh, sh),
    }


def reference_forward(sow, h0, p):
    """Pure-JAX reference mirroring PyTorch nn.Linear / nn.GRU (one step)."""
    x = sow[None, :]
    a = jnp.maximum(x @ p["fc1_w"].T + p["fc1_b"], 0.0)
    gi = a @ p["w_ih"].T + p["b_ih"]
    gh = h0 @ p["w_hh"].T + p["b_hh"]
    r = jax.nn.sigmoid(gi[:, :H] + gh[:, :H])
    z = jax.nn.sigmoid(gi[:, H:2 * H] + gh[:, H:2 * H])
    n = jnp.tanh(gi[:, 2 * H:] + r * gh[:, 2 * H:])
    h_new = (1.0 - z) * n + z * h0
    out = h_new @ p["fc2_w"].T + p["fc2_b"]
    return out[0], h_new


if __name__ == "__main__":
    key = jax.random.PRNGKey(0)
    k_param, k_in = jax.random.split(key)

    params = make_params(k_param)
    wslab = pack_params(params)                     # packed once, reused every call
    sow = jax.random.normal(k_in, (IN,), jnp.float32)
    h0 = jnp.zeros((1, H), jnp.float32)             # init_hidden()

    out, h_new = hypernetwork_forward(sow, h0, wslab)
    jax.block_until_ready((out, h_new))

    out_ref, h_ref = reference_forward(sow, h0, params)
    assert out.shape == (OUT,)
    assert h_new.shape == (1, H)
    assert float(jnp.max(jnp.abs(out - out_ref))) < 1e-4, "output mismatch vs reference"
    assert float(jnp.max(jnp.abs(h_new - h_ref))) < 1e-4, "hidden mismatch vs reference"

    print("KERNEL_OK")
</pallas_src>

<mosaic_0001>
module attributes {stable_mosaic.version = 11 : i64} {
  func.func @hypernet_kernel(%arg0: memref<2x128xf32, #tpu.memory_space<vmem>>, %arg1: memref<112x384xf32, #tpu.memory_space<vmem>>, %arg2: memref<2x128xf32, #tpu.memory_space<vmem>>) attributes {dimension_semantics = [], scalar_prefetch = 0 : i64, scratch_operands = 0 : i64, tpu.core_type = #tpu.core_type<tc>} {
    %c0 = arith.constant 0 : index
    %c0_0 = arith.constant 0 : index
    %0 = vector.load %arg0[%c0, %c0_0] : memref<2x128xf32, #tpu.memory_space<vmem>>, vector<1x8xf32>
    %c1 = arith.constant 1 : index
    %c0_1 = arith.constant 0 : index
    %1 = vector.load %arg0[%c1, %c0_1] : memref<2x128xf32, #tpu.memory_space<vmem>>, vector<1x128xf32>
    %c0_2 = arith.constant 0 : index
    %c0_3 = arith.constant 0 : index
    %2 = vector.load %arg1[%c0_2, %c0_3] : memref<112x384xf32, #tpu.memory_space<vmem>>, vector<8x128xf32>
    %c8 = arith.constant 8 : index
    %c0_4 = arith.constant 0 : index
    %3 = vector.load %arg1[%c8, %c0_4] : memref<112x384xf32, #tpu.memory_space<vmem>>, vector<32x384xf32>
    %c40 = arith.constant 40 : index
    %c0_5 = arith.constant 0 : index
    %4 = vector.load %arg1[%c40, %c0_5] : memref<112x384xf32, #tpu.memory_space<vmem>>, vector<32x384xf32>
    %c72 = arith.constant 72 : index
    %c0_6 = arith.constant 0 : index
    %5 = vector.load %arg1[%c72, %c0_6] : memref<112x384xf32, #tpu.memory_space<vmem>>, vector<32x128xf32>
    %c104 = arith.constant 104 : index
    %c0_7 = arith.constant 0 : index
    %6 = vector.load %arg1[%c104, %c0_7] : memref<112x384xf32, #tpu.memory_space<vmem>>, vector<1x128xf32>
    %c105 = arith.constant 105 : index
    %c0_8 = arith.constant 0 : index
    %7 = vector.load %arg1[%c105, %c0_8] : memref<112x384xf32, #tpu.memory_space<vmem>>, vector<1x384xf32>
    %c106 = arith.constant 106 : index
    %c0_9 = arith.constant 0 : index
    %8 = vector.load %arg1[%c106, %c0_9] : memref<112x384xf32, #tpu.memory_space<vmem>>, vector<1x384xf32>
    %c107 = arith.constant 107 : index
    %c0_10 = arith.constant 0 : index
    %9 = vector.load %arg1[%c107, %c0_10] : memref<112x384xf32, #tpu.memory_space<vmem>>, vector<1x128xf32>
    %cst = arith.constant dense<0.000000e+00> : vector<1x128xf32>
    %10 = tpu.matmul %0, %2, %cst {dimension_numbers = #tpu.dot_dimension_numbers<[1], [0], [0], [1], [0, 0, 1, 1], [], []>} : vector<1x8xf32>, vector<8x128xf32>, vector<1x128xf32> -> vector<1x128xf32>
    %11 = arith.addf %10, %6 : vector<1x128xf32>
    %cst_11 = arith.constant 0.000000e+00 : f32
    %12 = vector.broadcast %cst_11 : f32 to vector<1x128xf32>
    %13 = arith.maximumf %11, %12 : vector<1x128xf32>
    %14 = vector.extract_strided_slice %13 {offsets = [0, 0], sizes = [1, 32], strides = [1, 1]} : vector<1x128xf32> to vector<1x32xf32>
    %cst_12 = arith.constant dense<0.000000e+00> : vector<1x384xf32>
    %15 = tpu.matmul %14, %3, %cst_12 {dimension_numbers = #tpu.dot_dimension_numbers<[1], [0], [0], [1], [0, 0, 1, 1], [], []>} : vector<1x32xf32>, vector<32x384xf32>, vector<1x384xf32> -> vector<1x384xf32>
    %16 = arith.addf %15, %7 : vector<1x384xf32>
    %17 = vector.extract_strided_slice %1 {offsets = [0, 0], sizes = [1, 32], strides = [1, 1]} : vector<1x128xf32> to vector<1x32xf32>
    %cst_13 = arith.constant dense<0.000000e+00> : vector<1x384xf32>
    %18 = tpu.matmul %17, %4, %cst_13 {dimension_numbers = #tpu.dot_dimension_numbers<[1], [0], [0], [1], [0, 0, 1, 1], [], []>} : vector<1x32xf32>, vector<32x384xf32>, vector<1x384xf32> -> vector<1x384xf32>
    %19 = arith.addf %18, %8 : vector<1x384xf32>
    %20 = vector.extract_strided_slice %16 {offsets = [0, 0], sizes = [1, 128], strides = [1, 1]} : vector<1x384xf32> to vector<1x128xf32>
    %21 = vector.extract_strided_slice %19 {offsets = [0, 0], sizes = [1, 128], strides = [1, 1]} : vector<1x384xf32> to vector<1x128xf32>
    %22 = arith.addf %20, %21 : vector<1x128xf32>
    %23 = arith.negf %22 : vector<1x128xf32>
    %24 = math.exp %23 : vector<1x128xf32>
    %cst_14 = arith.constant 1.000000e+00 : f32
    %25 = vector.broadcast %cst_14 : f32 to vector<1x128xf32>
    %26 = arith.addf %25, %24 : vector<1x128xf32>
    %27 = arith.divf %25, %26 : vector<1x128xf32>
    %28 = vector.extract_strided_slice %16 {offsets = [0, 128], sizes = [1, 128], strides = [1, 1]} : vector<1x384xf32> to vector<1x128xf32>
    %29 = vector.extract_strided_slice %19 {offsets = [0, 128], sizes = [1, 128], strides = [1, 1]} : vector<1x384xf32> to vector<1x128xf32>
    %30 = arith.addf %28, %29 : vector<1x128xf32>
    %31 = arith.negf %30 : vector<1x128xf32>
    %32 = math.exp %31 : vector<1x128xf32>
    %cst_15 = arith.constant 1.000000e+00 : f32
    %33 = vector.broadcast %cst_15 : f32 to vector<1x128xf32>
    %34 = arith.addf %33, %32 : vector<1x128xf32>
    %35 = arith.divf %33, %34 : vector<1x128xf32>
    %36 = vector.extract_strided_slice %16 {offsets = [0, 256], sizes = [1, 128], strides = [1, 1]} : vector<1x384xf32> to vector<1x128xf32>
    %37 = vector.extract_strided_slice %19 {offsets = [0, 256], sizes = [1, 128], strides = [1, 1]} : vector<1x384xf32> to vector<1x128xf32>
    %38 = arith.mulf %27, %37 : vector<1x128xf32>
    %39 = arith.addf %36, %38 : vector<1x128xf32>
    %40 = math.tanh %39 : vector<1x128xf32>
    %cst_16 = arith.constant 1.000000e+00 : f32
    %41 = vector.broadcast %cst_16 : f32 to vector<1x128xf32>
    %42 = arith.subf %41, %35 : vector<1x128xf32>
    %43 = arith.mulf %42, %40 : vector<1x128xf32>
    %44 = arith.mulf %35, %1 : vector<1x128xf32>
    %45 = arith.addf %43, %44 : vector<1x128xf32>
    %46 = vector.extract_strided_slice %45 {offsets = [0, 0], sizes = [1, 32], strides = [1, 1]} : vector<1x128xf32> to vector<1x32xf32>
    %cst_17 = arith.constant dense<0.000000e+00> : vector<1x128xf32>
    %47 = tpu.matmul %46, %5, %cst_17 {dimension_numbers = #tpu.dot_dimension_numbers<[1], [0], [0], [1], [0, 0, 1, 1], [], []>} : vector<1x32xf32>, vector<32x128xf32>, vector<1x128xf32> -> vector<1x128xf32>
    %48 = arith.addf %47, %9 : vector<1x128xf32>
    %c0_18 = arith.constant 0 : index
    %c0_19 = arith.constant 0 : index
    %49 = vector.load %arg2[%c0_18, %c0_19] : memref<2x128xf32, #tpu.memory_space<vmem>>, vector<1x128xf32>
    tpu.vector_store %arg2[%c0_18, %c0_19], %48 {strides = array<i32>} : memref<2x128xf32, #tpu.memory_space<vmem>>, vector<1x128xf32>,
    %c1_20 = arith.constant 1 : index
    %c0_21 = arith.constant 0 : index
    %50 = vector.load %arg2[%c1_20, %c0_21] : memref<2x128xf32, #tpu.memory_space<vmem>>, vector<1x128xf32>
    tpu.vector_store %arg2[%c1_20, %c0_21], %45 {strides = array<i32>} : memref<2x128xf32, #tpu.memory_space<vmem>>, vector<1x128xf32>,
    return
  }
}

</mosaic_0001>

<bundles_post_ra>
// kernel: tpu_custom_call.1
= control target key start
LH: loop header
LB: loop body
LE: loop exit
PB: predicated region body
PF: predicated region fallthrough
CT: control target
= control target key end

     0   :  { %7 = vsyncpa [#allocation3], 0  ;;  %s864_s0 = inlined_call_operand.hbm [shape: f32[2,128], index: 0, kind: input, shape index: {}]   ;;  %s865_s1 = inlined_call_operand.hbm [shape: f32[112,384], index: 1, kind: input, shape index: {}]   ;;  %s866_s2 = inlined_call_operand.hbm [shape: f32[2,128], index: 2, kind: output, shape index: {}]  }
   0x1   :  { %8 = vsyncpa [#allocation6], 0 }
   0x2   :  { %9 = vsyncpa [#allocation4], 0  ;;  %s776_s9 = smov [#allocation2]   ;;  %s777_s11 = smov [#allocation5]  }
   0x3   :  { %s16_s10 = sshll.u32 %s776_s9, 4  ;;  %s25_s12 = sshll.u32 %s777_s11, 4  ;;  %s17_s10 = int_to_ptr.vmem [resolvable:$true] %s16_s10  ;;  %s799_s12 = int_to_ptr.vmem [resolvable:$true] %s25_s12 }
   0x4   :  { %s704_s15 = scalar_lea.hbm %s864_s0, 32 }
   0x5   :  { %p705_p0 = scmp.ne.s32.totalorder %s864_s0, %s704_s15  ;;  %p708_p1 = scmp.lt.u32.totalorder %s704_s15, %s864_s0 }
   0x7   :  { %p710_p2 = pnand %p708_p1, %p705_p0 }
   0x9   :  { %713 = shalt.err (!%p710_p2)
}
   0xa   :  { %s714_s20 = scalar_lea.vmem %s17_s10, 32  ;;  %p719_p4 = scmp.lt.s32.totalorder %s17_s10, %s17_s10 }
   0xb   :  { %p715_p3 = scmp.ne.s32.totalorder %s17_s10, %s714_s20  ;;  %p720_p5 = scmp.lt.s32.totalorder %s714_s20, %s714_s20 }
   0xd   :  { %p721_p6 = por %p720_p5, %p719_p4 }
   0xf   :  { %p722_p7 = pnand %p721_p6, %p715_p3 }
  0x11   :  { %725 = shalt.err (!%p722_p7)
}
  0x12   :  { %19 = dma.hbm_to_vmem [thread:$0]  %s864_s0, 32, %s17_s10, [#allocation3]  }
  0x13   :  { %s726_s25 = scalar_lea.hbm %s865_s1, 5376 }
  0x14   :  { %p727_p8 = scmp.ne.s32.totalorder %s865_s1, %s726_s25  ;;  %p730_p9 = scmp.lt.u32.totalorder %s726_s25, %s865_s1 }
  0x16   :  { %p732_p10 = pnand %p730_p9, %p727_p8 }
  0x18   :  { %735 = shalt.err (!%p732_p10)
}
  0x19   :  { %s736_s30 = scalar_lea.vmem %s799_s12, 5376  ;;  %p741_p12 = scmp.lt.s32.totalorder %s799_s12, %s799_s12 }
  0x1a   :  { %p737_p11 = scmp.ne.s32.totalorder %s799_s12, %s736_s30  ;;  %p742_p13 = scmp.lt.s32.totalorder %s736_s30, %s736_s30 }
  0x1c   :  { %p743_p0 = por %p742_p13, %p741_p12 }
  0x1e   :  { %p744_p1 = pnand %p743_p0, %p737_p11 }
  0x20   :  { %747 = shalt.err (!%p744_p1)
}
  0x21   :  { %s778_s0 = smov 384   ;;  %s779_s3 = smov 24  }
  0x22   :  { %31 = dma.hbm_to_vmem [thread:$0]  %s865_s1, 5376, %s799_s12, [#allocation6], %s778_s0, %s778_s0, %s779_s3  }
  0x23   :  { %770 = dma.done.wait [#allocation3], 32  }
  0x24   :  { %771 = vsyncadd [#allocation3], 4294967264 }
  0x25   :  { %772 = dma.done.wait [#allocation6], 5376  }
  0x26   :  { %773 = vsyncadd [#allocation6], 4294961920  ;;  %v780_v0 = vmov 0.0   ;;  %vm781_vm0 = vmmov 0   ;;  %vm75_vm1 = vcmask 64512   ;;  %v40_v1 = vld [vmem:[#allocation5] sm:$0xff]  ;;  %v151_v52 = vlaneseq }
  0x27   :  { %608 = vmatprep.subr.mxu0 %v780_v0  ;;  %610 = vmatprep.mubr.msk.f32.mxu0 %vm781_vm0, %v780_v0  ;;  %v38_v2 = vld [vmem:[#allocation2] sm:$0x1]  ;;  %v42_v3 = vld [vmem:[#allocation5 + $0x20] sm:$0xff]  ;;  %v44_v6 = vld [vmem:[#allocation5 + $0x30] sm:$0xff]  ;;  %v782_v9 = vmov 0.0|0.0   ;;  %vm166_vm2 = vcmask 261120  }
  0x28   :  { %234 = vmatprep.mubr.f32.mxu1 %v780_v0  ;;  %609 = vmatpush3.msra.mxu0 %v40_v1  ;;  %v45_v4 = vld [vmem:[#allocation5 + $0x38] sm:$0xff]  ;;  %v43_v10 = vld [vmem:[#allocation5 + $0x28] sm:$0xff]  ;;  %v46_v11 = vld [vmem:[#allocation5 + $0x40] sm:$0xff]  ;;  %v152_v53 = vshrl.u32 %v151_v52, 7  ;;  %s783_s1 = smov [#allocation7]  }
  0x29   :  { %v41_v5 = vld [vmem:[#allocation5 + $0x18] sm:$0xff]  ;;  %611 = vmatmul.mubr.msk.f32.vlgmr.msra.gmra.mrb[0].mxu0 %vm75_vm1, %v38_v2  ;;  %v646_v7 = vpack.c.bf16 %v45_v4, %v42_v3  ;;  %654 = vmatprep.subr.bf16.mxu0 %v782_v9  ;;  %v655_v12 = vpack.c.bf16 %v46_v11, %v43_v10  ;;  %v48_v13 = vld [vmem:[#allocation5 + $0x50] sm:$0xff]  ;;  %v51_v14 = vld [vmem:[#allocation5 + $0x68] sm:$0xff]  ;;  %s573_s6 = sshll.u32 %s783_s1, 4  ;;  %s574_s6 = int_to_ptr.vmem [resolvable:$true] %s573_s6 }
  0x2a   :  { %v648_v8 = vpack.c.bf16 %v44_v6, %v41_v5  ;;  %621 = vmatprep.mubr.msk.f32.mxu0 %vm781_vm0, %v780_v0  ;;  %v650_v15 = vpack.c.bf16 %v51_v14, %v48_v13  ;;  %v47_v16 = vld [vmem:[#allocation5 + $0x48] sm:$0xff]  ;;  %v50_v17 = vld [vmem:[#allocation5 + $0x60] sm:$0xff]  ;;  %v49_v18 = vld [vmem:[#allocation5 + $0x58] sm:$0xff]  ;;  %v153_v54 = vsub.s32 0, %v152_v53  ;;  %v157_v58 = vsub.s32 1, %v152_v53  ;;  %s748_s7 = scalar_lea.vmem %s574_s6, 32  ;;  %p753_p3 = scmp.lt.s32.totalorder %s574_s6, %s574_s6 }
  0x2b   :  { %647 = vmatprep.subr.bf16.mxu1 %v646_v7  ;;  %656 = vmatpush3.bf16.msra.mxu0 %v655_v12  ;;  %v652_v19 = vpack.c.bf16 %v50_v17, %v47_v16  ;;  %v52_v20 = vld [vmem:[#allocation5 + $0x70] sm:$0xff]  ;;  %v54_v22 = vld [vmem:[#allocation5 + $0x80] sm:$0xff]  ;;  %v57_v23 = vld [vmem:[#allocation5 + $0x98] sm:$0xff]  ;;  %v161_v12 = vsub.s32 2, %v152_v53  ;;  %p749_p2 = scmp.ne.s32.totalorder %s574_s6, %s748_s7  ;;  %p754_p4 = scmp.lt.s32.totalorder %s748_s7, %s748_s7 }
  0x2c   :  { %649 = vmatpush1.bf16.msra.mxu1 %v648_v8  ;;  %657 = vmatprep.subr.bf16.mxu0 %v782_v9  ;;  %v658_v21 = vpack.c.bf16 %v52_v20, %v49_v18  ;;  %v660_v24 = vpack.c.bf16 %v57_v23, %v54_v22  ;;  %v69_v25 = vld [vmem:[#allocation5 + $0x138] ss:$0 sm:$0xff]  ;;  %v56_v27 = vld [vmem:[#allocation5 + $0x90] sm:$0xff]  ;;  %v63_v30 = vld [vmem:[#allocation5 + $0xc8] sm:$0xff] }
  0x2d   :  { %651 = vmatprep.subr.bf16.mxu1 %v650_v15  ;;  %v53_v26 = vld [vmem:[#allocation5 + $0x78] sm:$0xff]  ;;  %v60_v28 = vld [vmem:[#allocation5 + $0xb0] sm:$0xff]  ;;  %v55_v31 = vld [vmem:[#allocation5 + $0x88] sm:$0xff]  ;;  %p755_p5 = por %p754_p4, %p753_p3 }
  0x2e   :  { %v58_v32 = vld [vmem:[#allocation5 + $0xa0] sm:$0xff]  ;;  %v662_v35 = vpack.c.bf16 %v56_v27, %v53_v26  ;;  %v664_v37 = vpack.c.bf16 %v63_v30, %v60_v28  ;;  %v59_v38 = vld [vmem:[#allocation5 + $0xa8] sm:$0xff]  ;;  %v61_v41 = vld [vmem:[#allocation5 + $0xb8] sm:$0xff] }
  0x2f   :  { %659 = vmatpush3.bf16.msra.mxu0 %v658_v21  ;;  %v62_v39 = vld [vmem:[#allocation5 + $0xc0] sm:$0xff]  ;;  %v669_v40 = vpack.c.bf16 %v58_v32, %v55_v31  ;;  %v64_v42 = vld [vmem:[#allocation5 + $0xd0] sm:$0xff]  ;;  %v39_v45 = vld [vmem:[#allocation2 + $0x1] sm:$0x1]  ;;  %p756_p6 = pnand %p755_p5, %p749_p2 }
  0x30   :  { %653 = vmatpush1.bf16.msra.mxu1 %v652_v19  ;;  %668 = vmatprep.subr.bf16.mxu0 %v782_v9  ;;  %v666_v43 = vpack.c.bf16 %v62_v39, %v59_v38  ;;  %v672_v44 = vpack.c.bf16 %v64_v42, %v61_v41  ;;  %v65_v46 = vld [vmem:[#allocation5 + $0xd8] sm:$0xff]  ;;  %v66_v47 = vld [vmem:[#allocation5 + $0xf0] sm:$0xff]  ;;  %v67_v48 = vld [vmem:[#allocation5 + $0x108] sm:$0xff] }
  0x31   :  { %661 = vmatprep.subr.bf16.mxu1 %v660_v24  ;;  %v675_v49 = vpack.c.bf16 %v66_v47, %v65_v46  ;;  %v68_v50 = vld [vmem:[#allocation5 + $0x120] sm:$0xff]  ;;  %v74_v28 = vld [vmem:[#allocation5 + $0x13b] ss:$0 sm:$0xff] }
  0x32   :  { %v678_v51 = vpack.c.bf16 %v68_v50, %v67_v48  ;;  %v73_v55 = vld [vmem:[#allocation5 + $0x13a] ss:$8 sm:$0x7]  ;;  %v71_v56 = vld [vmem:[#allocation5 + $0x139] ss:$8 sm:$0x7] }
  0x33   :  { %v154_v60 = vrot.slane %v71_v56, %v153_v54  ;;  %v315_v61 = vrot.slane %v73_v55, %v153_v54  ;;  %v158_v62 = vrot.slane %v71_v56, %v157_v58  ;;  %v319_v63 = vrot.slane %v73_v55, %v157_v58 }
  0x34   :  { %v323_v13 = vrot.slane %v73_v55, %v161_v12  ;;  %v162_v15 = vrot.slane %v71_v56, %v161_v12 }
  0x35   :  { %v682_v2 = vadd.f32 %v319_v63, %v158_v62 }
  0xfc   :  { %v145_v29 = vpop.f32.mrb[0].mxu0 }
  0xfd   :  { %v146_v33 = vadd.f32 %v145_v29, %v69_v25  ;;  %v612_v34 = vpop.f32.mrb[1].mxu0 }
  0xff   :  { %v149_v36 = vmax.f32 %v146_v33, 0.0 }
 0x101   :  { %584 = vmatmul.mubr.msk.f32.vlgmr.msra.gmra.mrb[0].mxu1 %vm166_vm2, %v149_v36  ;;  %622 = vmatmul.mubr.msk.f32.vlgmr.msra.gmra.mrb[2].mxu0 %vm166_vm2, %v149_v36 }
 0x102   :  { %663 = vmatpush1.bf16.msra.mxu1 %v662_v35  ;;  %394 = vmatprep.mubr.f32.mxu1 %v780_v0 }
 0x103   :  { %665 = vmatprep.subr.bf16.mxu1 %v664_v37  ;;  %670 = vmatpush3.bf16.msra.mxu0 %v669_v40 }
 0x104   :  { %671 = vmatprep.subr.bf16.mxu0 %v782_v9  ;;  %632 = vmatprep.mubr.msk.f32.mxu0 %vm781_vm0, %v780_v0 }
 0x106   :  { %667 = vmatpush1.bf16.msra.mxu1 %v666_v43 }
 0x107   :  { %673 = vmatpush3.bf16.msra.mxu0 %v672_v44  ;;  %674 = vmatprep.subr.bf16.mxu1 %v782_v9 }
 0x109   :  { %586 = vmatmul.mubr.msk.f32.vlgmr.msra.gmra.mrb[0].mxu1 %vm166_vm2, %v39_v45 }
 0x10a   :  { %633 = vmatmul.mubr.msk.f32.vlgmr.msra.gmra.mrb[4].mxu0 %vm166_vm2, %v39_v45  ;;  %643 = vmatprep.mubr.msk.f32.mxu1 %vm781_vm0, %v780_v0  ;;  %v680_v0 = vadd.f32 %v315_v61, %v154_v60 }
 0x10b   :  { %676 = vmatpush3.bf16.msra.mxu1 %v675_v49 }
 0x10c   :  { %677 = vmatprep.subr.bf16.mxu1 %v782_v9 }
 0x10f   :  { %679 = vmatpush3.bf16.msra.mxu1 %v678_v51 }
 0x1d4   :  { %v307_v57 = vpop.f32.mrb[2].mxu0 }
 0x1d5   :  { %v623_v59 = vpop.f32.mrb[3].mxu0  ;;  %v308_v19 = vadd.f32 %v307_v57, %v162_v15 }
 0x1dc   :  { %v396_v1 = vpop.f32.mrb[0].mxu1 }
 0x1dd   :  { %v681_v3 = vadd.f32 %v680_v0, %v396_v1  ;;  %v398_v4 = vpop.f32.mrb[1].mxu1  ;;  %v467_v5 = vpop.f32.mrb[4].mxu0 }
 0x1de   :  { %v634_v6 = vpop.f32.mrb[5].mxu0  ;;  %v683_v8 = vadd.f32 %v682_v2, %v398_v4  ;;  %v468_v17 = vadd.f32 %v467_v5, %v323_v13 }
 0x1df   :  { %v588_v7 = vmul.f32 -1.442695, %v681_v3 }
 0x1e0   :  { %v589_v9 = vmul.f32 -1.442695, %v683_v8 }
 0x1e1   :  { %694 = vpow2.f32 %v588_v7 }
 0x1e2   :  { %696 = vpow2.f32 %v589_v9 }
 0x1eb   :  { %v695_v10 = vpop.eup %694 }
 0x1ec   :  { %v475_v11 = vadd.f32 1.0, %v695_v10  ;;  %v697_v14 = vpop.eup %696 }
 0x1ed   :  { %v482_v16 = vadd.f32 1.0, %v697_v14 }
 0x1ee   :  { %698 = vrcp.f32 %v475_v11 }
 0x1ef   :  { %700 = vrcp.f32 %v482_v16 }
 0x1f8   :  { %v699_v18 = vpop.eup %698 }
 0x1f9   :  { %v485_v20 = vmul.f32 %v699_v18, %v468_v17  ;;  %v701_v22 = vpop.eup %700 }
 0x1fa   :  { %v488_v23 = vsub.f32 1.0, %v701_v22  ;;  %v490_v26 = vmul.f32 %v701_v22, %v39_v45 }
 0x1fb   :  { %v486_v21 = vadd.f32 %v485_v20, %v308_v19 }
 0x1fd   :  { %702 = vtanh.f32 %v486_v21 }
 0x207   :  { %v703_v24 = vpop.eup %702 }
 0x208   :  { %v489_v25 = vmul.f32 %v703_v24, %v488_v23 }
 0x20a   :  { %v491_v27 = vadd.f32 %v490_v26, %v489_v25 }
 0x20c   :  { %644 = vmatmul.mubr.msk.f32.vlgmr.msra.gmra.mrb[2].mxu1 %vm166_vm2, %v491_v27  ;;  %566 = vst [vmem:[#allocation7 + $0x1] sm:$0x1] %v491_v27 }
 0x2df   :  { %v561_v29 = vpop.f32.mrb[2].mxu1 }
 0x2e0   :  { %v562_v30 = vadd.f32 %v561_v29, %v74_v28  ;;  %v645_v31 = vpop.f32.mrb[3].mxu1 }
 0x2e2   :  { %565 = vst [vmem:[#allocation7] sm:$0x1] %v562_v30 }
 0x2e3   :  { %759 = shalt.err (!%p756_p6)
}
 0x2e4   :  { %s760_s10 = scalar_lea.hbm %s866_s2, 32 }
 0x2e5   :  { %p761_p7 = scmp.ne.s32.totalorder %s866_s2, %s760_s10  ;;  %p764_p8 = scmp.lt.u32.totalorder %s760_s10, %s866_s2 }
 0x2e7   :  { %p766_p9 = pnand %p764_p8, %p761_p7 }
 0x2e9   :  { %769 = shalt.err (!%p766_p9)
}
 0x2ea   :  { %576 = dma.vmem_to_hbm [thread:$0]  %s574_s6, 32, %s866_s2, [#allocation4]  }
 0x2eb   :  { %774 = dma.done.wait [#allocation4], 32  }
 0x2ec   :  { %775 = vsyncadd [#allocation4], 4294967264 }
 0x2ed   :  { %580 = vsyncpa [#allocation3], 1 }
 0x2ee   :  { %581 = vsyncpa [#allocation6], 1 }
 0x2ef   :  { %582 = vsyncpa [#allocation4], 1 }

</bundles_post_ra>
